<compile_context>
chip_gen: v7x
topology: tpu7x:2x2x1
jax: 0.10.0
libtpu: 0.0.40
codegen_flags: <defaults>
</compile_context>

<pallas_src>
import functools

import jax
import jax.numpy as jnp
import numpy as np
from jax.experimental import pallas as pl
from jax.experimental.pallas import tpu as pltpu


def _round_up(x, m):
    return ((x + m - 1) // m) * m


# ---------------------------------------------------------------------------
# Kernels
# ---------------------------------------------------------------------------
def _encoder_kernel_resident(x_ref, w_ref, b_ref, o_ref, *, matmul_dtype,
                             no_imgnorm, use_abs):
    # x_ref: (tile_b, img_dim)   w_ref: (img_dim, embed)   b_ref: (1, embed)
    # Cast the x tile to the (pre-cast) weight dtype inside the kernel: VPU
    # work hidden under the pipeline, no extra wrapper-side HBM pass.
    x = x_ref[...].astype(matmul_dtype)
    feats = jnp.dot(x, w_ref[...], preferred_element_type=jnp.float32)  # MXU
    feats = feats + b_ref[...].astype(jnp.float32)
    if not no_imgnorm:
        sq = jnp.sum(feats * feats, axis=-1, keepdims=True)
        feats = feats * jax.lax.rsqrt(sq)                              # EUP
    if use_abs:
        feats = jnp.abs(feats)
    o_ref[...] = feats.astype(o_ref.dtype)


def _encoder_kernel_ktiled(x_ref, w_ref, b_ref, o_ref, acc_ref, *,
                           matmul_dtype, no_imgnorm, use_abs):
    # x_ref: (tile_b, tile_k)  w_ref: (tile_k, embed)  acc_ref: (tile_b, embed) f32
    k = pl.program_id(1)

    @pl.when(k == 0)
    def _():
        acc_ref[...] = jnp.zeros_like(acc_ref)

    x = x_ref[...].astype(matmul_dtype)
    acc_ref[...] += jnp.dot(x, w_ref[...], preferred_element_type=jnp.float32)

    @pl.when(k == pl.num_programs(1) - 1)
    def _():
        feats = acc_ref[...] + b_ref[...].astype(jnp.float32)
        if not no_imgnorm:
            # NOTE: the full embed dim is present in each output block, so the
            # fused row-wise l2norm is exact (no N-tiling anywhere).
            sq = jnp.sum(feats * feats, axis=-1, keepdims=True)
            feats = feats * jax.lax.rsqrt(sq)
        if use_abs:
            feats = jnp.abs(feats)
        o_ref[...] = feats.astype(o_ref.dtype)


# ---------------------------------------------------------------------------
# Wrapper
# ---------------------------------------------------------------------------
def _vmem_budget_cap():
    try:
        cap = int(pltpu.get_tpu_info().vmem_capacity_bytes)
    except Exception:
        cap = 64 << 20  # conservative (v7x per-TC VMEM)
    # ~3/4 of physical VMEM, always leave >= 12 MiB headroom for compiler
    # scratch: 48 MiB on v7x (64 MiB), 96 MiB on v5e/v6e (128 MiB).
    return max(min(cap * 3 // 4, cap - (12 << 20)), 32 << 20)


def _pick_tile_k(img_dim, embed, w_item, budget):
    # Largest multiple of 128 that divides img_dim (so the K reduction never
    # sees a padded partial block) and keeps the double-buffered W slice well
    # within the budget.
    best = None
    k = 128
    while k <= img_dim:
        if img_dim % k == 0 and 2 * k * embed * w_item <= max(budget // 3, 1 << 20):
            best = k
        k += 128
    return best


def encoder_image_precomp(images, weight_t, bias, *, use_abs=False,
                          no_imgnorm=False, out_dtype=None, tile_b=512,
                          tile_k=None, force_k_tiling=False):
    """Fused fc + optional l2norm + optional abs.

    images:   (B, img_dim)
    weight_t: (img_dim, embed) -- nn.Linear weight stored transposed, ALREADY
              in the desired MXU dtype (cast once at init; bf16 recommended).
    bias:     (embed,)
    """
    B, img_dim = images.shape
    embed = weight_t.shape[1]
    matmul_dtype = weight_t.dtype                 # never re-cast W per call
    out_dtype = images.dtype if out_dtype is None else jnp.dtype(out_dtype)

    x_item = jnp.dtype(images.dtype).itemsize
    w_item = jnp.dtype(matmul_dtype).itemsize
    o_item = jnp.dtype(out_dtype).itemsize
    w_bytes = img_dim * embed * w_item
    bias_bytes = 8 * _round_up(embed, 128) * 4

    budget_cap = _vmem_budget_cap()

    # ---- batch tile -------------------------------------------------------
    if B <= 256:
        tile_b = B                                   # one full-batch block
    else:
        tile_b = max(256, (min(int(tile_b), 1024) // 256) * 256)
        tile_b = min(tile_b, _round_up(B, 256))

    # ---- resident-W vs K-tiled W streaming --------------------------------
    use_k = bool(force_k_tiling) or (w_bytes > budget_cap // 2)
    if use_k:
        if tile_k is None:
            tile_k = _pick_tile_k(img_dim, embed, w_item, budget_cap)
        elif (img_dim % int(tile_k)) != 0 or (int(tile_k) % 128) != 0:
            tile_k = None
        if tile_k is None:
            # TODO(synk): pad/mask the K axis for img_dim not a multiple of 128.
            use_k = False
        else:
            tile_k = int(tile_k)

    bias2d = bias.reshape(1, embed)

    # ---- advisory cost estimate --------------------------------------------
    cost = pl.CostEstimate(
        flops=2 * B * img_dim * embed,
        transcendentals=0 if no_imgnorm else B,
        bytes_accessed=int(B * img_dim * x_item + w_bytes + embed * 4
                           + B * embed * o_item))

    if not use_k:
        needed = (2 * tile_b * img_dim * x_item        # x double-buffered
                  + 2 * tile_b * embed * o_item        # out double-buffered
                  + w_bytes + bias_bytes)              # W/bias resident
        if needed > budget_cap and tile_b > 256:
            tile_b = 256
            needed = (2 * tile_b * img_dim * x_item + 2 * tile_b * embed * o_item
                      + w_bytes + bias_bytes)
        grid_b = pl.cdiv(B, tile_b)
        kernel = functools.partial(_encoder_kernel_resident,
                                   matmul_dtype=matmul_dtype,
                                   no_imgnorm=no_imgnorm, use_abs=use_abs)
        grid_spec = pltpu.PrefetchScalarGridSpec(
            num_scalar_prefetch=0,
            grid=(grid_b,),
            in_specs=[
                pl.BlockSpec((tile_b, img_dim), lambda i: (i, 0)),
                # W and bias: whole arrays, single resident VMEM copy.
                pl.BlockSpec(memory_space=pltpu.MemorySpace.VMEM),
                pl.BlockSpec(memory_space=pltpu.MemorySpace.VMEM),
            ],
            out_specs=pl.BlockSpec((tile_b, embed), lambda i: (i, 0)))
        dims = ("parallel",)
    else:
        grid_b = pl.cdiv(B, tile_b)
        grid_k = img_dim // tile_k
        needed = (2 * tile_b * tile_k * x_item
                  + 2 * tile_k * embed * w_item
                  + 2 * tile_b * embed * o_item
                  + tile_b * embed * 4                 # f32 accumulator
                  + bias_bytes)
        kernel = functools.partial(_encoder_kernel_ktiled,
                                   matmul_dtype=matmul_dtype,
                                   no_imgnorm=no_imgnorm, use_abs=use_abs)
        grid_spec = pltpu.PrefetchScalarGridSpec(
            num_scalar_prefetch=0,
            grid=(grid_b, grid_k),
            in_specs=[
                pl.BlockSpec((tile_b, tile_k), lambda i, k: (i, k)),
                pl.BlockSpec((tile_k, embed), lambda i, k: (k, 0)),
                pl.BlockSpec(memory_space=pltpu.MemorySpace.VMEM),
            ],
            out_specs=pl.BlockSpec((tile_b, embed), lambda i, k: (i, 0)),
            scratch_shapes=[pltpu.VMEM((tile_b, embed), jnp.float32)])
        dims = ("parallel", "arbitrary")

    vmem_limit = int(max(min(max(needed + (4 << 20), 32 << 20), budget_cap),
                         needed + (2 << 20)))

    return pl.pallas_call(
        kernel,
        out_shape=jax.ShapeDtypeStruct((B, embed), out_dtype),
        grid_spec=grid_spec,
        compiler_params=pltpu.CompilerParams(
            dimension_semantics=dims,
            vmem_limit_bytes=vmem_limit),
        cost_estimate=cost,
    )(images, weight_t, bias2d)


# ---------------------------------------------------------------------------
# Reference & tests
# ---------------------------------------------------------------------------
def reference(x, w, b, use_abs=False, no_imgnorm=False):
    f = x @ w + b
    if not no_imgnorm:
        f = f / jnp.sqrt(jnp.sum(f * f, axis=-1, keepdims=True))
    if use_abs:
        f = jnp.abs(f)
    return f


if __name__ == "__main__":
    # Small shapes consistent with the module's forward (precomputed image
    # feature vectors, not NCHW images).
    B, img_dim, embed_size = 16, 256, 128

    key = jax.random.PRNGKey(0)
    k_img, k_w = jax.random.split(key)

    images = jax.random.normal(k_img, (B, img_dim), dtype=jnp.float32)

    # Deterministic Xavier init identical to the module's init_weights().
    # PyTorch stores weight as (out, in); we keep the transpose (in, out).
    r = float(np.sqrt(6.0) / np.sqrt(img_dim + embed_size))
    weight_t_f32 = jax.random.uniform(k_w, (img_dim, embed_size),
                                      minval=-r, maxval=r, dtype=jnp.float32)
    bias = jnp.zeros((embed_size,), dtype=jnp.float32)
    # bf16 weights cast ONCE here ("at init"), per the performance review.
    weight_t_bf16 = weight_t_f32.astype(jnp.bfloat16)

    # 1) f32 weights: exact match to the module's math.
    out = jax.block_until_ready(encoder_image_precomp(images, weight_t_f32, bias))
    np.testing.assert_allclose(np.asarray(out),
                               np.asarray(reference(images, weight_t_f32, bias)),
                               rtol=1e-5, atol=1e-5)

    # 2) use_abs / no_imgnorm branches.
    out_abs = jax.block_until_ready(
        encoder_image_precomp(images, weight_t_f32, bias,
                              use_abs=True, no_imgnorm=True))
    np.testing.assert_allclose(
        np.asarray(out_abs),
        np.asarray(reference(images, weight_t_f32, bias, True, True)),
        rtol=1e-5, atol=1e-5)

    # 3) ragged batch: no pad / slice copies, full-batch block.
    images_odd = images[:13]
    out_odd = jax.block_until_ready(
        encoder_image_precomp(images_odd, weight_t_f32, bias))
    np.testing.assert_allclose(
        np.asarray(out_odd),
        np.asarray(reference(images_odd, weight_t_f32, bias)),
        rtol=1e-5, atol=1e-5)

    # 4) bf16 weights (pre-cast once); x cast to bf16 in-kernel, f32 accum.
    #    Deliberate accuracy trade vs the f32 PyTorch module: compare against
    #    a reference that sees the same bf16 quantisation of x and W.
    out_bf16 = jax.block_until_ready(
        encoder_image_precomp(images, weight_t_bf16, bias))
    ref_bf16 = reference(images.astype(jnp.bfloat16).astype(jnp.float32),
                         weight_t_bf16.astype(jnp.float32), bias)
    np.testing.assert_allclose(np.asarray(out_bf16), np.asarray(ref_bf16),
                               rtol=1e-4, atol=1e-4)

    # 5) K-tiled W-streaming fallback (forced at small shape; 2 K steps).
    out_kt = jax.block_until_ready(
        encoder_image_precomp(images, weight_t_f32, bias,
                              force_k_tiling=True, tile_k=128))
    np.testing.assert_allclose(
        np.asarray(out_kt),
        np.asarray(reference(images, weight_t_f32, bias)),
        rtol=1e-5, atol=1e-5)

    # 6) bf16 output dtype (halves the output HBM write).
    out_b16o = jax.block_until_ready(
        encoder_image_precomp(images, weight_t_bf16, bias,
                              out_dtype=jnp.bfloat16))
    np.testing.assert_allclose(np.asarray(out_b16o.astype(jnp.float32)),
                               np.asarray(ref_bf16), rtol=0, atol=1e-2)

    print("KERNEL_OK")
</pallas_src>

<mosaic_0001>
module attributes {stable_mosaic.version = 11 : i64} {
  func.func @_encoder_kernel_resident(%arg0: i32, %arg1: memref<16x256xf32, #tpu.memory_space<vmem>>, %arg2: memref<256x128xf32, #tpu.memory_space<vmem>>, %arg3: memref<1x128xf32, #tpu.memory_space<vmem>>, %arg4: memref<16x128xf32, #tpu.memory_space<vmem>>) attributes {dimension_semantics = [#tpu.dimension_semantics<parallel>], iteration_bounds = array<i64: 1>, scalar_prefetch = 0 : i64, scratch_operands = 0 : i64, tpu.core_type = #tpu.core_type<tc>, window_params = [{transform_indices = @transform_0, window_bounds = array<i64: 16, 256>}, {pipeline_mode = #tpu.pipeline_mode<synchronous>, transform_indices = @transform_1, window_bounds = array<i64: 256, 128>}, {pipeline_mode = #tpu.pipeline_mode<synchronous>, transform_indices = @transform_2, window_bounds = array<i64: 1, 128>}, {transform_indices = @transform_3, window_bounds = array<i64: 16, 128>}]} {
    %c0 = arith.constant 0 : index
    %c0_0 = arith.constant 0 : index
    %0 = vector.load %arg1[%c0, %c0_0] : memref<16x256xf32, #tpu.memory_space<vmem>>, vector<16x256xf32>
    %c0_1 = arith.constant 0 : index
    %c0_2 = arith.constant 0 : index
    %1 = vector.load %arg2[%c0_1, %c0_2] : memref<256x128xf32, #tpu.memory_space<vmem>>, vector<256x128xf32>
    %cst = arith.constant dense<0.000000e+00> : vector<16x128xf32>
    %2 = tpu.matmul %0, %1, %cst {dimension_numbers = #tpu.dot_dimension_numbers<[1], [0], [0], [1], [0, 0, 1, 1], [], []>} : vector<16x256xf32>, vector<256x128xf32>, vector<16x128xf32> -> vector<16x128xf32>
    %c0_3 = arith.constant 0 : index
    %c0_4 = arith.constant 0 : index
    %3 = vector.load %arg3[%c0_3, %c0_4] : memref<1x128xf32, #tpu.memory_space<vmem>>, vector<1x128xf32>
    %4 = vector.broadcast %3 : vector<1x128xf32> to vector<16x128xf32>
    %5 = arith.addf %2, %4 : vector<16x128xf32>
    %6 = arith.mulf %5, %5 : vector<16x128xf32>
    %cst_5 = arith.constant dense<0.000000e+00> : vector<16xf32>
    %7 = vector.multi_reduction <add>, %6, %cst_5 [1] : vector<16x128xf32> to vector<16xf32>
    %8 = vector.shape_cast %7 : vector<16xf32> to vector<16x1xf32>
    %9 = math.rsqrt %8 : vector<16x1xf32>
    %10 = vector.broadcast %9 : vector<16x1xf32> to vector<16x128xf32>
    %11 = arith.mulf %5, %10 : vector<16x128xf32>
    %c0_6 = arith.constant 0 : index
    %c0_7 = arith.constant 0 : index
    %12 = vector.load %arg4[%c0_6, %c0_7] : memref<16x128xf32, #tpu.memory_space<vmem>>, vector<16x128xf32>
    tpu.vector_store %arg4[%c0_6, %c0_7], %11 {strides = array<i32>} : memref<16x128xf32, #tpu.memory_space<vmem>>, vector<16x128xf32>,
    return
  }
  func.func @transform_0(%arg0: i32) -> (i32, i32) {
    %c0_i32 = arith.constant 0 : i32
    %c0_i32_0 = arith.constant 0 : i32
    return %arg0, %c0_i32 : i32, i32
  }
  func.func @transform_1(%arg0: i32) -> (i32, i32) {
    %c0_i32 = arith.constant 0 : i32
    %c0_i32_0 = arith.constant 0 : i32
    %c0_i32_1 = arith.constant 0 : i32
    return %c0_i32, %c0_i32_0 : i32, i32
  }
  func.func @transform_2(%arg0: i32) -> (i32, i32) {
    %c0_i32 = arith.constant 0 : i32
    %c0_i32_0 = arith.constant 0 : i32
    %c0_i32_1 = arith.constant 0 : i32
    return %c0_i32, %c0_i32_0 : i32, i32
  }
  func.func @transform_3(%arg0: i32) -> (i32, i32) {
    %c0_i32 = arith.constant 0 : i32
    %c0_i32_0 = arith.constant 0 : i32
    return %arg0, %c0_i32 : i32, i32
  }
}

</mosaic_0001>

<bundles_post_ra>
// kernel: tpu_custom_call.1
= control target key start
LH: loop header
LB: loop body
LE: loop exit
PB: predicated region body
PF: predicated region fallthrough
CT: control target
= control target key end

     0   :  { %8 = vsyncpa [#allocation3], 0  ;;  %s433_s0 = inlined_call_operand.hbm [shape: f32[16,256], index: 0, kind: input, shape index: {}]   ;;  %s434_s1 = inlined_call_operand.hbm [shape: f32[256,128], index: 1, kind: input, shape index: {}]   ;;  %s435_s2 = inlined_call_operand.vmem [shape: f32[1,128], index: 2, kind: input, shape index: {}]   ;;  %s436_s3 = inlined_call_operand.hbm [shape: f32[16,128], index: 3, kind: output, shape index: {}]  }
   0x1   :  { %9 = vsyncpa [#allocation6], 0 }
   0x2   :  { %10 = vsyncpa [#allocation4], 0  ;;  %s361_s12 = smov [#allocation2]   ;;  %s289_s16 = scalar_lea.hbm %s433_s0, 512 }
   0x3   :  { %s16_s13 = sshll.u32 %s361_s12, 4  ;;  %p290_p0 = scmp.ne.s32.totalorder %s433_s0, %s289_s16  ;;  %s17_s13 = int_to_ptr.vmem [resolvable:$true] %s16_s13 }
   0x4   :  { %p293_p1 = scmp.lt.u32.totalorder %s289_s16, %s433_s0 }
   0x6   :  { %p295_p2 = pnand %p293_p1, %p290_p0 }
   0x8   :  { %298 = shalt.err (!%p295_p2)
}
   0x9   :  { %s299_s21 = scalar_lea.vmem %s17_s13, 512  ;;  %p304_p4 = scmp.lt.s32.totalorder %s17_s13, %s17_s13 }
   0xa   :  { %p300_p3 = scmp.ne.s32.totalorder %s17_s13, %s299_s21  ;;  %p305_p5 = scmp.lt.s32.totalorder %s299_s21, %s299_s21 }
   0xc   :  { %p306_p6 = por %p305_p5, %p304_p4 }
   0xe   :  { %p307_p7 = pnand %p306_p6, %p300_p3 }
  0x10   :  { %310 = shalt.err (!%p307_p7)
}
  0x11   :  { %s362_s22 = smov 256   ;;  %s363_s23 = smov 16  }
  0x12   :  { %22 = dma.hbm_to_vmem [thread:$0]  %s433_s0, 512, %s17_s13, [#allocation3], %s362_s22, %s362_s22, %s363_s23  }
  0x13   :  { %s364_s26 = smov [#allocation5]   ;;  %s311_s30 = scalar_lea.hbm %s434_s1, 4096 }
  0x14   :  { %s28_s27 = sshll.u32 %s364_s26, 4  ;;  %p312_p8 = scmp.ne.s32.totalorder %s434_s1, %s311_s30  ;;  %s29_s27 = int_to_ptr.vmem [resolvable:$true] %s28_s27 }
  0x15   :  { %p315_p9 = scmp.lt.u32.totalorder %s311_s30, %s434_s1 }
  0x17   :  { %p317_p10 = pnand %p315_p9, %p312_p8 }
  0x19   :  { %320 = shalt.err (!%p317_p10)
}
  0x1a   :  { %s321_s8 = scalar_lea.vmem %s29_s27, 4096  ;;  %p326_p12 = scmp.lt.s32.totalorder %s29_s27, %s29_s27 }
  0x1b   :  { %p322_p11 = scmp.ne.s32.totalorder %s29_s27, %s321_s8  ;;  %p327_p13 = scmp.lt.s32.totalorder %s321_s8, %s321_s8 }
  0x1d   :  { %p328_p0 = por %p327_p13, %p326_p12 }
  0x1f   :  { %p329_p1 = pnand %p328_p0, %p322_p11 }
  0x21   :  { %332 = shalt.err (!%p329_p1)
}
  0x22   :  { %s365_s0 = smov 128   ;;  %s366_s9 = smov 8  }
  0x23   :  { %34 = dma.hbm_to_vmem [thread:$0]  %s434_s1, 4096, %s29_s27, [#allocation6], %s365_s0, %s365_s0, %s366_s9  }
  0x24   :  { %355 = dma.done.wait [#allocation3], 512  }
  0x25   :  { %356 = vsyncadd [#allocation3], 4294966784 }
  0x26   :  { %357 = dma.done.wait [#allocation6], 4096  }
  0x27   :  { %358 = vsyncadd [#allocation6], 4294963200  ;;  %v63_v0 = vld [vmem:[#allocation5 + $0x80] sm:$0xff]  ;;  %v64_v1 = vld [vmem:[#allocation5 + $0x88] sm:$0xff]  ;;  %s367_s13 = smov [#allocation7]  }
  0x28   :  { %v47_v2 = vld [vmem:[#allocation5] sm:$0xff]  ;;  %v230_v3 = vpack.c.bf16 %v64_v1, %v63_v0  ;;  %v48_v4 = vld [vmem:[#allocation5 + $0x8] sm:$0xff]  ;;  %v65_v5 = vld [vmem:[#allocation5 + $0x90] sm:$0xff]  ;;  %s178_s14 = sshll.u32 %s367_s13, 4  ;;  %s179_s14 = int_to_ptr.vmem [resolvable:$true] %s178_s14 }
  0x29   :  { %v66_v6 = vld [vmem:[#allocation5 + $0x98] sm:$0xff]  ;;  %v232_v7 = vpack.c.bf16 %v48_v4, %v47_v2  ;;  %v49_v9 = vld [vmem:[#allocation5 + $0x10] sm:$0xff]  ;;  %v67_v11 = vld [vmem:[#allocation5 + $0xa0] sm:$0xff]  ;;  %p338_p3 = scmp.lt.s32.totalorder %s179_s14, %s179_s14 }
  0x2a   :  { %v234_v8 = vpack.c.bf16 %v66_v6, %v65_v5  ;;  %v50_v10 = vld [vmem:[#allocation5 + $0x18] sm:$0xff]  ;;  %231 = vmatprep.subr.bf16.mxu0 %v230_v3  ;;  %262 = vmatprep.subr.bf16.mxu1 %v230_v3  ;;  %v68_v12 = vld [vmem:[#allocation5 + $0xa8] sm:$0xff]  ;;  %v51_v15 = vld [vmem:[#allocation5 + $0x20] sm:$0xff] }
  0x2b   :  { %233 = vmatpush3.bf16.msra.mxu0 %v232_v7  ;;  %270 = vmatpush3.bf16.msra.mxu1 %v232_v7  ;;  %v236_v13 = vpack.c.bf16 %v50_v10, %v49_v9  ;;  %v238_v14 = vpack.c.bf16 %v68_v12, %v67_v11  ;;  %v52_v16 = vld [vmem:[#allocation5 + $0x28] sm:$0xff]  ;;  %v69_v17 = vld [vmem:[#allocation5 + $0xb0] sm:$0xff]  ;;  %v70_v18 = vld [vmem:[#allocation5 + $0xb8] sm:$0xff] }
  0x2c   :  { %235 = vmatprep.subr.bf16.mxu0 %v234_v8  ;;  %263 = vmatprep.subr.bf16.mxu1 %v234_v8  ;;  %v240_v19 = vpack.c.bf16 %v52_v16, %v51_v15  ;;  %v242_v20 = vpack.c.bf16 %v70_v18, %v69_v17  ;;  %v53_v21 = vld [vmem:[#allocation5 + $0x30] sm:$0xff]  ;;  %v54_v22 = vld [vmem:[#allocation5 + $0x38] sm:$0xff]  ;;  %v71_v23 = vld [vmem:[#allocation5 + $0xc0] sm:$0xff] }
  0x2d   :  { %v72_v24 = vld [vmem:[#allocation5 + $0xc8] sm:$0xff]  ;;  %v46_v26 = vld [vmem:[#allocation2 + $0x18] sm:$0xff]  ;;  %v244_v27 = vpack.c.bf16 %v54_v22, %v53_v21  ;;  %v55_v29 = vld [vmem:[#allocation5 + $0x40] sm:$0xff] }
  0x2e   :  { %v44_v25 = vld [vmem:[#allocation2 + $0x8] sm:$0xff]  ;;  %v246_v28 = vpack.c.bf16 %v72_v24, %v71_v23  ;;  %v73_v31 = vld [vmem:[#allocation5 + $0xd0] sm:$0xff]  ;;  %v74_v32 = vld [vmem:[#allocation5 + $0xd8] sm:$0xff]  ;;  %155 = vmatprep.mubr.f32.mxu1 %v46_v26 }
  0x2f   :  { %237 = vmatpush3.bf16.msra.mxu0 %v236_v13  ;;  %271 = vmatpush3.bf16.msra.mxu1 %v236_v13  ;;  %v56_v30 = vld [vmem:[#allocation5 + $0x48] sm:$0xff]  ;;  %v250_v34 = vpack.c.bf16 %v74_v32, %v73_v31  ;;  %v57_v35 = vld [vmem:[#allocation5 + $0x50] sm:$0xff]  ;;  %v58_v36 = vld [vmem:[#allocation5 + $0x58] sm:$0xff] }
  0x30   :  { %239 = vmatprep.subr.bf16.mxu0 %v238_v14  ;;  %264 = vmatprep.subr.bf16.mxu1 %v238_v14  ;;  %v248_v33 = vpack.c.bf16 %v56_v30, %v55_v29  ;;  %v75_v37 = vld [vmem:[#allocation5 + $0xe0] sm:$0xff]  ;;  %v76_v38 = vld [vmem:[#allocation5 + $0xe8] sm:$0xff]  ;;  %v252_v39 = vpack.c.bf16 %v58_v36, %v57_v35  ;;  %v77_v43 = vld [vmem:[#allocation5 + $0xf0] sm:$0xff] }
  0x31   :  { %150 = vmatprep.mubr.f32.mxu0 %v44_v25  ;;  %v254_v40 = vpack.c.bf16 %v76_v38, %v75_v37  ;;  %v59_v41 = vld [vmem:[#allocation5 + $0x60] sm:$0xff]  ;;  %v60_v42 = vld [vmem:[#allocation5 + $0x68] sm:$0xff]  ;;  %v78_v44 = vld [vmem:[#allocation5 + $0xf8] sm:$0xff] }
  0x32   :  { %v256_v45 = vpack.c.bf16 %v60_v42, %v59_v41  ;;  %v258_v46 = vpack.c.bf16 %v78_v44, %v77_v43  ;;  %v61_v47 = vld [vmem:[#allocation5 + $0x70] sm:$0xff]  ;;  %v62_v48 = vld [vmem:[#allocation5 + $0x78] sm:$0xff]  ;;  %v43_v50 = vld [vmem:[#allocation2] sm:$0xff] }
  0x33   :  { %241 = vmatpush3.bf16.msra.mxu0 %v240_v19  ;;  %272 = vmatpush3.bf16.msra.mxu1 %v240_v19  ;;  %v260_v49 = vpack.c.bf16 %v62_v48, %v61_v47  ;;  %v45_v51 = vld [vmem:[#allocation2 + $0x10] sm:$0xff]  ;;  %v191_v55 = vld [vmem:[%s435_s2] ss:$0 sm:$0xff]  ;;  %s333_s2 = scalar_lea.vmem %s179_s14, 256 }
  0x34   :  { %243 = vmatprep.subr.bf16.mxu0 %v242_v20  ;;  %265 = vmatprep.subr.bf16.mxu1 %v242_v20  ;;  %p334_p2 = scmp.ne.s32.totalorder %s179_s14, %s333_s2  ;;  %p339_p4 = scmp.lt.s32.totalorder %s333_s2, %s333_s2 }
  0x36   :  { %p340_p5 = por %p339_p4, %p338_p3 }
  0x37   :  { %245 = vmatpush3.bf16.msra.mxu0 %v244_v27  ;;  %273 = vmatpush3.bf16.msra.mxu1 %v244_v27 }
  0x38   :  { %247 = vmatprep.subr.bf16.mxu0 %v246_v28  ;;  %266 = vmatprep.subr.bf16.mxu1 %v246_v28  ;;  %p341_p6 = pnand %p340_p5, %p334_p2 }
  0x3b   :  { %249 = vmatpush3.bf16.msra.mxu0 %v248_v33  ;;  %274 = vmatpush3.bf16.msra.mxu1 %v248_v33 }
  0x3c   :  { %251 = vmatprep.subr.bf16.mxu0 %v250_v34  ;;  %267 = vmatprep.subr.bf16.mxu1 %v250_v34 }
  0x3f   :  { %253 = vmatpush3.bf16.msra.mxu0 %v252_v39  ;;  %275 = vmatpush3.bf16.msra.mxu1 %v252_v39 }
  0x40   :  { %255 = vmatprep.subr.bf16.mxu0 %v254_v40  ;;  %268 = vmatprep.subr.bf16.mxu1 %v254_v40 }
  0x43   :  { %257 = vmatpush3.bf16.msra.mxu0 %v256_v45  ;;  %276 = vmatpush3.bf16.msra.mxu1 %v256_v45 }
  0x44   :  { %259 = vmatprep.subr.bf16.mxu0 %v258_v46  ;;  %269 = vmatprep.subr.bf16.mxu1 %v258_v46 }
  0x47   :  { %261 = vmatpush3.bf16.msra.mxu0 %v260_v49  ;;  %277 = vmatpush3.bf16.msra.mxu1 %v260_v49 }
  0x4a   :  { %151 = vmatmul.mubr.f32.vlgmr.msra.gmra.mrb[0].mxu0 %v43_v50  ;;  %156 = vmatmul.mubr.f32.vlgmr.msra.gmra.mrb[0].mxu1 %v45_v51 }
 0x11d   :  { %v224_v52 = vpop.f32.mrb[0].mxu0  ;;  %v227_v53 = vpop.f32.mrb[0].mxu1 }
 0x11e   :  { %v225_v54 = vpop.f32.mrb[1].mxu0  ;;  %v228_v56 = vpop.f32.mrb[1].mxu1 }
 0x11f   :  { %v226_v57 = vadd.f32 %v225_v54, %v224_v52  ;;  %v229_v58 = vadd.f32 %v228_v56, %v227_v53 }
 0x121   :  { %v158_v59 = vadd.f32 %v229_v58, %v191_v55  ;;  %v153_v60 = vadd.f32 %v226_v57, %v191_v55 }
 0x123   :  { %v161_v61 = vmul.f32 %v153_v60, %v153_v60  ;;  %v162_v62 = vmul.f32 %v158_v59, %v158_v59 }
 0x125   :  { %163 = vadd.xlane.f32.xlu0 %v161_v61 }
 0x129   :  { %165 = vadd.xlane.f32.xlu0 %v162_v62 }
 0x1b2   :  { %v164_v63 = vpop.xlane.xlu0 %163 }
 0x1b3   :  { %285 = vrsqrt.f32 %v164_v63 }
 0x1b6   :  { %v166_v0 = vpop.xlane.xlu0 %165 }
 0x1b7   :  { %287 = vrsqrt.f32 %v166_v0 }
 0x1bd   :  { %v286_v1 = vpop.eup %285 }
 0x1be   :  { %v169_v2 = vmul.f32 %v286_v1, %v153_v60 }
 0x1c0   :  { %171 = vst [vmem:[#allocation7] sm:$0xff] %v169_v2 }
 0x1c1   :  { %v288_v3 = vpop.eup %287 }
 0x1c2   :  { %v170_v4 = vmul.f32 %v288_v3, %v158_v59 }
 0x1c4   :  { %172 = vst [vmem:[#allocation7 + $0x8] sm:$0xff] %v170_v4 }
 0x1c5   :  { %344 = shalt.err (!%p341_p6)
}
 0x1c6   :  { %s345_s17 = scalar_lea.hbm %s436_s3, 256 }
 0x1c7   :  { %p346_p7 = scmp.ne.s32.totalorder %s436_s3, %s345_s17  ;;  %p349_p8 = scmp.lt.u32.totalorder %s345_s17, %s436_s3 }
 0x1c9   :  { %p351_p9 = pnand %p349_p8, %p346_p7 }
 0x1cb   :  { %354 = shalt.err (!%p351_p9)
}
 0x1cc   :  { %184 = dma.vmem_to_hbm [thread:$0]  %s179_s14, 256, %s436_s3, [#allocation4], %s365_s0, %s365_s0, %s366_s9  }
 0x1cd   :  { %359 = dma.done.wait [#allocation4], 256  }
 0x1ce   :  { %360 = vsyncadd [#allocation4], 4294967040 }
 0x1cf   :  { %188 = vsyncpa [#allocation3], 1 }
 0x1d0   :  { %189 = vsyncpa [#allocation6], 1 }
 0x1d1   :  { %190 = vsyncpa [#allocation4], 1 }

</bundles_post_ra>
